<compile_context>
chip_gen: v7x
topology: tpu7x:2x2x1
jax: 0.10.0
libtpu: 0.0.40
codegen_flags: <defaults>
</compile_context>

<pallas_src>
import functools

import jax
import jax.numpy as jnp
from jax import lax
from jax.experimental import pallas as pl
from jax.experimental.pallas import tpu as pltpu

# ---------------- model sizes (small, synthetic) ----------------
B = 2           # batch
S = 8           # sequence length
H = 32          # hidden size
F = 64          # FFN intermediate size
V = 128         # vocab size (== lane width -> one-hot embedding matmul)
L = 2           # num_labels
LANES = 128

# ---------------- packed-parameter layout (all row offsets % 8 == 0) --------
EMB_R0 = 0                 # [V, H]   embedding table
POS_R0 = EMB_R0 + V        # [S, H]   positional embeddings
WQKV_R0 = POS_R0 + S       # [H, 3H]  fused Q/K/V projection
WO_R0 = WQKV_R0 + H        # [H, H]   attention output projection
W1_R0 = WO_R0 + H          # [H, F]   FFN up
W2_R0 = W1_R0 + H          # [F, H]   FFN down
WC_R0 = W2_R0 + F          # [H, 128] classifier weight (zero-padded lanes)
VEC_R0 = WC_R0 + H         # 8 rows of small vectors (biases / LN params)
P_ROWS = VEC_R0 + 8        # = 336 rows (multiple of 8)

INT_ROWS = ((B * S + B + 7) // 8) * 8   # ids + labels, padded to sublane mult


# =============== single fused Pallas kernel ===============
def fused_rag_kernel(ints_ref, maskb_ref, p_ref, out_ref):
    # ---- static ref-view slices of the single packed parameter tile ----
    emb = p_ref[EMB_R0:EMB_R0 + V, 0:H]            # [V, H]
    pos = p_ref[POS_R0:POS_R0 + S, 0:H]            # [S, H]
    wqkv = p_ref[WQKV_R0:WQKV_R0 + H, 0:3 * H]     # [H, 3H]
    wo = p_ref[WO_R0:WO_R0 + H, 0:H]               # [H, H]
    w1 = p_ref[W1_R0:W1_R0 + H, 0:F]               # [H, F]
    w2 = p_ref[W2_R0:W2_R0 + F, 0:H]               # [F, H]
    wc = p_ref[WC_R0:WC_R0 + H, :]                 # [H, 128] (lane-padded)
    b1 = p_ref[VEC_R0 + 0:VEC_R0 + 1, 0:F]         # [1, F]
    b2 = p_ref[VEC_R0 + 1:VEC_R0 + 2, 0:H]         # [1, H]
    ln1g = p_ref[VEC_R0 + 2:VEC_R0 + 3, 0:H]
    ln1b = p_ref[VEC_R0 + 3:VEC_R0 + 4, 0:H]
    ln2g = p_ref[VEC_R0 + 4:VEC_R0 + 5, 0:H]
    ln2b = p_ref[VEC_R0 + 5:VEC_R0 + 6, 0:H]
    bc = p_ref[VEC_R0 + 6:VEC_R0 + 7, :]           # [1, 128] padded classifier bias

    ids = ints_ref[0:B * S, :]                     # [B*S, 1] int32 token ids
    labels = ints_ref[B * S:B * S + B, :]          # [B, 1]   int32 labels
    maskb = maskb_ref[...]                         # [B, S]   additive key-mask bias

    # ---- embedding lookup as one-hot MXU matmul (V == 128 lanes) ----
    onehot = (lax.broadcasted_iota(jnp.int32, (B * S, V), 1) == ids)
    x = jnp.dot(onehot.astype(jnp.float32), emb,
                preferred_element_type=jnp.float32)            # [B*S, H]
    x = x + jnp.concatenate([pos] * B, axis=0)                 # + positional

    # ---- fused QKV projection: one [B*S,H] x [H,3H] matmul ----
    qkv = jnp.dot(x, wqkv, preferred_element_type=jnp.float32)
    q = qkv[:, 0:H]
    k = qkv[:, H:2 * H]
    v = qkv[:, 2 * H:3 * H]

    scale = 1.0 / jnp.sqrt(jnp.float32(H))
    attn_rows = []
    for b in range(B):                 # B=2, unrolled at trace time
        qb = q[b * S:(b + 1) * S, :]
        kb = k[b * S:(b + 1) * S, :]
        vb = v[b * S:(b + 1) * S, :]
        scores = jnp.dot(qb, kb.T, preferred_element_type=jnp.float32) * scale
        scores = scores + maskb[b:b + 1, :]        # mask keys (bcast over queries)
        scores = scores - jnp.max(scores, axis=-1, keepdims=True)
        p = jnp.exp(scores)
        p = p * pl.reciprocal(jnp.sum(p, axis=-1, keepdims=True), approx=True)
        attn_rows.append(jnp.dot(p, vb, preferred_element_type=jnp.float32))
    attn = jnp.concatenate(attn_rows, axis=0)                  # [B*S, H]
    attn = jnp.dot(attn, wo, preferred_element_type=jnp.float32)

    def layernorm(h, g, beta):
        mu = jnp.mean(h, axis=-1, keepdims=True)
        var = jnp.mean((h - mu) ** 2, axis=-1, keepdims=True)
        return (h - mu) * lax.rsqrt(var + 1e-5) * g + beta

    h1 = layernorm(x + attn, ln1g, ln1b)

    # ---- feed-forward ----
    ff = jnp.dot(h1, w1, preferred_element_type=jnp.float32) + b1
    ff = jax.nn.gelu(ff, approximate=True)
    ff = jnp.dot(ff, w2, preferred_element_type=jnp.float32) + b2
    h2 = layernorm(h1 + ff, ln2g, ln2b)                        # [B*S, H]

    # ---- CLS pooling + classifier (weights zero-padded to 128 lanes) ----
    cls = jnp.concatenate([h2[b * S:b * S + 1, :] for b in range(B)], axis=0)
    logits_pad = jnp.dot(cls, wc,
                         preferred_element_type=jnp.float32) + bc    # [B, 128]

    # ---- cross-entropy (mean over batch) restricted to the first L columns ----
    col = lax.broadcasted_iota(jnp.int32, (B, LANES), 1)
    valid = col < L
    zl = jnp.where(valid, logits_pad, jnp.float32(-1e30))
    z = zl - jnp.max(zl, axis=-1, keepdims=True)
    ez = jnp.where(valid, jnp.exp(z), 0.0)
    lse = jnp.log(jnp.sum(ez, axis=-1, keepdims=True))
    logprobs = jnp.where(valid, z - lse, 0.0)
    onehot_lab = (valid & (col == labels)).astype(jnp.float32)
    loss = -jnp.sum(onehot_lab * logprobs) * jnp.float32(1.0 / B)

    # ---- single lane-dense (8,128) output: rows 0..B-1 logits, row B = loss ----
    out_tile = jnp.concatenate(
        [logits_pad,
         jnp.zeros((1, LANES), jnp.float32) + loss,
         jnp.zeros((8 - B - 1, LANES), jnp.float32)], axis=0)
    out_ref[...] = out_tile


# =============== full forward (mirrors SimpleRAGModel.forward) ===============
def simple_rag_forward(packed_params, input_ids, attention_mask, labels=None):
    ids = input_ids.reshape(B * S, 1).astype(jnp.int32)
    lab = (jnp.zeros((B, 1), jnp.int32) if labels is None
           else labels.reshape(B, 1).astype(jnp.int32))
    ints = jnp.zeros((INT_ROWS, 1), jnp.int32)
    ints = ints.at[0:B * S, :].set(ids)
    ints = ints.at[B * S:B * S + B, :].set(lab)
    mask_bias = (1.0 - attention_mask.astype(jnp.float32)) * jnp.float32(-1e9)

    out = pl.pallas_call(
        fused_rag_kernel,
        out_shape=jax.ShapeDtypeStruct((8, LANES), jnp.float32),
        compiler_params=pltpu.CompilerParams(vmem_limit_bytes=32 * 1024 * 1024),
    )(ints, mask_bias, packed_params)

    logits = out[:B, :L]
    if labels is None:
        return logits
    loss = out[B, 0]
    return loss, logits


# =============== deterministic parameter init + packing ===============
def init_params(key):
    ks = jax.random.split(key, 12)
    n = lambda k, shape, s=0.02: (s * jax.random.normal(k, shape)).astype(jnp.float32)
    return {
        "emb": n(ks[0], (V, H)),
        "pos": n(ks[1], (S, H)),
        "wq": n(ks[2], (H, H)),
        "wk": n(ks[3], (H, H)),
        "wv": n(ks[4], (H, H)),
        "wo": n(ks[5], (H, H)),
        "w1": n(ks[6], (H, F)),
        "b1": jnp.zeros((F,), jnp.float32),
        "w2": n(ks[7], (F, H)),
        "b2": jnp.zeros((H,), jnp.float32),
        "ln1g": jnp.ones((H,), jnp.float32),
        "ln1b": jnp.zeros((H,), jnp.float32),
        "ln2g": jnp.ones((H,), jnp.float32),
        "ln2b": jnp.zeros((H,), jnp.float32),
        "wc": n(ks[8], (H, L)),
        "bc": jnp.zeros((L,), jnp.float32),
    }


def pack_params(p):
    """One-time packing of ALL parameters into a single (P_ROWS, 128) f32 tile."""
    P = jnp.zeros((P_ROWS, LANES), jnp.float32)
    P = P.at[EMB_R0:EMB_R0 + V, :H].set(p["emb"])
    P = P.at[POS_R0:POS_R0 + S, :H].set(p["pos"])
    wqkv = jnp.concatenate([p["wq"], p["wk"], p["wv"]], axis=1)     # [H, 3H]
    P = P.at[WQKV_R0:WQKV_R0 + H, :3 * H].set(wqkv)
    P = P.at[WO_R0:WO_R0 + H, :H].set(p["wo"])
    P = P.at[W1_R0:W1_R0 + H, :F].set(p["w1"])
    P = P.at[W2_R0:W2_R0 + F, :H].set(p["w2"])
    P = P.at[WC_R0:WC_R0 + H, :L].set(p["wc"])
    P = P.at[VEC_R0 + 0, :F].set(p["b1"])
    P = P.at[VEC_R0 + 1, :H].set(p["b2"])
    P = P.at[VEC_R0 + 2, :H].set(p["ln1g"])
    P = P.at[VEC_R0 + 3, :H].set(p["ln1b"])
    P = P.at[VEC_R0 + 4, :H].set(p["ln2g"])
    P = P.at[VEC_R0 + 5, :H].set(p["ln2b"])
    P = P.at[VEC_R0 + 6, :L].set(p["bc"])
    return P


# =============== pure-JAX reference (same math, for verification) ===============
def reference_forward(p, input_ids, attention_mask, labels):
    x = p["emb"][input_ids] + p["pos"][None, :, :]                  # [B,S,H]
    q = x @ p["wq"]; k = x @ p["wk"]; v = x @ p["wv"]
    scores = jnp.einsum("bqh,bkh->bqk", q, k) / jnp.sqrt(jnp.float32(H))
    bias = (1.0 - attention_mask.astype(jnp.float32)) * -1e9
    scores = scores + bias[:, None, :]
    attn = jnp.einsum("bqk,bkh->bqh", jax.nn.softmax(scores, axis=-1), v) @ p["wo"]

    def ln(h, g, b):
        mu = h.mean(-1, keepdims=True)
        var = ((h - mu) ** 2).mean(-1, keepdims=True)
        return (h - mu) * lax.rsqrt(var + 1e-5) * g + b

    h1 = ln(x + attn, p["ln1g"], p["ln1b"])
    ff = jax.nn.gelu(h1 @ p["w1"] + p["b1"], approximate=True) @ p["w2"] + p["b2"]
    h2 = ln(h1 + ff, p["ln2g"], p["ln2b"])
    logits = h2[:, 0, :] @ p["wc"] + p["bc"]
    logp = jax.nn.log_softmax(logits, axis=-1)
    loss = -jnp.mean(jnp.take_along_axis(logp, labels[:, None], axis=1))
    return loss, logits


if __name__ == "__main__":
    key = jax.random.PRNGKey(0)
    kp, ki, kl = jax.random.split(key, 3)

    params = init_params(kp)
    packed = pack_params(params)

    input_ids = jax.random.randint(ki, (B, S), 0, V, dtype=jnp.int32)
    # attention mask with some padding at the tail of the second row
    lengths = jnp.array([S, S - 2], dtype=jnp.int32)
    attention_mask = (jnp.arange(S)[None, :] < lengths[:, None]).astype(jnp.int32)
    labels = jax.random.randint(kl, (B,), 0, L, dtype=jnp.int32)

    fwd = jax.jit(functools.partial(simple_rag_forward, packed))
    loss, logits = fwd(input_ids, attention_mask, labels)
    jax.block_until_ready((loss, logits))

    logits_only = jax.jit(
        lambda ids, m: simple_rag_forward(packed, ids, m, labels=None)
    )(input_ids, attention_mask)
    jax.block_until_ready(logits_only)

    # shape / finiteness checks + loose numerical check vs. pure-JAX reference
    assert logits.shape == (B, L) and loss.shape == ()
    assert logits_only.shape == (B, L)
    assert bool(jnp.isfinite(loss)) and bool(jnp.all(jnp.isfinite(logits)))

    ref_loss, ref_logits = reference_forward(params, input_ids, attention_mask, labels)
    assert bool(jnp.allclose(logits, ref_logits, rtol=2e-2, atol=2e-2))
    assert bool(jnp.allclose(loss, ref_loss, rtol=2e-2, atol=2e-2))
    assert bool(jnp.allclose(logits_only, ref_logits, rtol=2e-2, atol=2e-2))

    print("KERNEL_OK")
</pallas_src>

<mosaic_0001>
module attributes {stable_mosaic.version = 11 : i64} {
  func.func @fused_rag_kernel(%arg0: memref<24x1xi32, #tpu.memory_space<vmem>>, %arg1: memref<2x8xf32, #tpu.memory_space<vmem>>, %arg2: memref<336x128xf32, #tpu.memory_space<vmem>>, %arg3: memref<8x128xf32, #tpu.memory_space<vmem>>) attributes {dimension_semantics = [], scalar_prefetch = 0 : i64, scratch_operands = 0 : i64, tpu.core_type = #tpu.core_type<tc>} {
    %c0 = arith.constant 0 : index
    %c0_0 = arith.constant 0 : index
    %0 = vector.load %arg2[%c0, %c0_0] : memref<336x128xf32, #tpu.memory_space<vmem>>, vector<128x32xf32>
    %c128 = arith.constant 128 : index
    %c0_1 = arith.constant 0 : index
    %1 = vector.load %arg2[%c128, %c0_1] : memref<336x128xf32, #tpu.memory_space<vmem>>, vector<8x32xf32>
    %c136 = arith.constant 136 : index
    %c0_2 = arith.constant 0 : index
    %2 = vector.load %arg2[%c136, %c0_2] : memref<336x128xf32, #tpu.memory_space<vmem>>, vector<32x96xf32>
    %c168 = arith.constant 168 : index
    %c0_3 = arith.constant 0 : index
    %3 = vector.load %arg2[%c168, %c0_3] : memref<336x128xf32, #tpu.memory_space<vmem>>, vector<32x32xf32>
    %c200 = arith.constant 200 : index
    %c0_4 = arith.constant 0 : index
    %4 = vector.load %arg2[%c200, %c0_4] : memref<336x128xf32, #tpu.memory_space<vmem>>, vector<32x64xf32>
    %c232 = arith.constant 232 : index
    %c0_5 = arith.constant 0 : index
    %5 = vector.load %arg2[%c232, %c0_5] : memref<336x128xf32, #tpu.memory_space<vmem>>, vector<64x32xf32>
    %c296 = arith.constant 296 : index
    %c0_6 = arith.constant 0 : index
    %6 = vector.load %arg2[%c296, %c0_6] : memref<336x128xf32, #tpu.memory_space<vmem>>, vector<32x128xf32>
    %c328 = arith.constant 328 : index
    %c0_7 = arith.constant 0 : index
    %7 = vector.load %arg2[%c328, %c0_7] : memref<336x128xf32, #tpu.memory_space<vmem>>, vector<1x64xf32>
    %c329 = arith.constant 329 : index
    %c0_8 = arith.constant 0 : index
    %8 = vector.load %arg2[%c329, %c0_8] : memref<336x128xf32, #tpu.memory_space<vmem>>, vector<1x32xf32>
    %c330 = arith.constant 330 : index
    %c0_9 = arith.constant 0 : index
    %9 = vector.load %arg2[%c330, %c0_9] : memref<336x128xf32, #tpu.memory_space<vmem>>, vector<1x32xf32>
    %c331 = arith.constant 331 : index
    %c0_10 = arith.constant 0 : index
    %10 = vector.load %arg2[%c331, %c0_10] : memref<336x128xf32, #tpu.memory_space<vmem>>, vector<1x32xf32>
    %c332 = arith.constant 332 : index
    %c0_11 = arith.constant 0 : index
    %11 = vector.load %arg2[%c332, %c0_11] : memref<336x128xf32, #tpu.memory_space<vmem>>, vector<1x32xf32>
    %c333 = arith.constant 333 : index
    %c0_12 = arith.constant 0 : index
    %12 = vector.load %arg2[%c333, %c0_12] : memref<336x128xf32, #tpu.memory_space<vmem>>, vector<1x32xf32>
    %c334 = arith.constant 334 : index
    %c0_13 = arith.constant 0 : index
    %13 = vector.load %arg2[%c334, %c0_13] : memref<336x128xf32, #tpu.memory_space<vmem>>, vector<1x128xf32>
    %c0_14 = arith.constant 0 : index
    %c0_15 = arith.constant 0 : index
    %14 = vector.load %arg0[%c0_14, %c0_15] : memref<24x1xi32, #tpu.memory_space<vmem>>, vector<16x1xi32>
    %c16 = arith.constant 16 : index
    %c0_16 = arith.constant 0 : index
    %15 = vector.load %arg0[%c16, %c0_16] : memref<24x1xi32, #tpu.memory_space<vmem>>, vector<2x1xi32>
    %c0_17 = arith.constant 0 : index
    %c0_18 = arith.constant 0 : index
    %16 = vector.load %arg1[%c0_17, %c0_18] : memref<2x8xf32, #tpu.memory_space<vmem>>, vector<2x8xf32>
    %17 = tpu.iota {dimensions = array<i32: 1>} : vector<16x128xi32>
    %18 = vector.broadcast %14 : vector<16x1xi32> to vector<16x128xi32>
    %19 = arith.cmpi eq, %17, %18 : vector<16x128xi32>
    %20 = arith.extui %19 : vector<16x128xi1> to vector<16x128xi32>
    %21 = arith.sitofp %20 : vector<16x128xi32> to vector<16x128xf32>
    %cst = arith.constant dense<0.000000e+00> : vector<16x32xf32>
    %22 = tpu.matmul %21, %0, %cst {dimension_numbers = #tpu.dot_dimension_numbers<[1], [0], [0], [1], [0, 0, 1, 1], [], []>} : vector<16x128xf32>, vector<128x32xf32>, vector<16x32xf32> -> vector<16x32xf32>
    %23 = tpu.concatenate %1, %1 in 0 : vector<8x32xf32>, vector<8x32xf32> -> vector<16x32xf32>
    %24 = arith.addf %22, %23 : vector<16x32xf32>
    %cst_19 = arith.constant dense<0.000000e+00> : vector<16x96xf32>
    %25 = tpu.matmul %24, %2, %cst_19 {dimension_numbers = #tpu.dot_dimension_numbers<[1], [0], [0], [1], [0, 0, 1, 1], [], []>} : vector<16x32xf32>, vector<32x96xf32>, vector<16x96xf32> -> vector<16x96xf32>
    %26 = vector.extract_strided_slice %25 {offsets = [0, 0], sizes = [16, 32], strides = [1, 1]} : vector<16x96xf32> to vector<16x32xf32>
    %27 = vector.extract_strided_slice %25 {offsets = [0, 32], sizes = [16, 32], strides = [1, 1]} : vector<16x96xf32> to vector<16x32xf32>
    %28 = vector.extract_strided_slice %25 {offsets = [0, 64], sizes = [16, 32], strides = [1, 1]} : vector<16x96xf32> to vector<16x32xf32>
    %cst_20 = arith.constant 3.200000e+01 : f32
    %29 = math.sqrt %cst_20 : f32
    %cst_21 = arith.constant 1.000000e+00 : f32
    %30 = arith.divf %cst_21, %29 : f32
    %31 = vector.extract_strided_slice %26 {offsets = [0, 0], sizes = [8, 32], strides = [1, 1]} : vector<16x32xf32> to vector<8x32xf32>
    %32 = vector.extract_strided_slice %27 {offsets = [0, 0], sizes = [8, 32], strides = [1, 1]} : vector<16x32xf32> to vector<8x32xf32>
    %33 = vector.extract_strided_slice %28 {offsets = [0, 0], sizes = [8, 32], strides = [1, 1]} : vector<16x32xf32> to vector<8x32xf32>
    %34 = tpu.transpose %32, [1, 0] : vector<8x32xf32> -> vector<32x8xf32>
    %cst_22 = arith.constant dense<0.000000e+00> : vector<8x8xf32>
    %35 = tpu.matmul %31, %34, %cst_22 {dimension_numbers = #tpu.dot_dimension_numbers<[1], [0], [0], [1], [0, 0, 1, 1], [], []>} : vector<8x32xf32>, vector<32x8xf32>, vector<8x8xf32> -> vector<8x8xf32>
    %36 = vector.broadcast %30 : f32 to vector<8x8xf32>
    %37 = arith.mulf %35, %36 : vector<8x8xf32>
    %38 = vector.extract_strided_slice %16 {offsets = [0, 0], sizes = [1, 8], strides = [1, 1]} : vector<2x8xf32> to vector<1x8xf32>
    %39 = vector.broadcast %38 : vector<1x8xf32> to vector<8x8xf32>
    %40 = arith.addf %37, %39 : vector<8x8xf32>
    %cst_23 = arith.constant dense<0xFF800000> : vector<8xf32>
    %41 = vector.multi_reduction <maximumf>, %40, %cst_23 [1] : vector<8x8xf32> to vector<8xf32>
    %42 = vector.shape_cast %41 : vector<8xf32> to vector<8x1xf32>
    %43 = vector.broadcast %42 : vector<8x1xf32> to vector<8x8xf32>
    %44 = arith.subf %40, %43 : vector<8x8xf32>
    %45 = math.exp %44 : vector<8x8xf32>
    %cst_24 = arith.constant dense<0.000000e+00> : vector<8xf32>
    %46 = vector.multi_reduction <add>, %45, %cst_24 [1] : vector<8x8xf32> to vector<8xf32>
    %47 = vector.shape_cast %46 : vector<8xf32> to vector<8x1xf32>
    %48 = tpu.reciprocal %47 {approx = true} : vector<8x1xf32> -> vector<8x1xf32>
    %49 = vector.broadcast %48 : vector<8x1xf32> to vector<8x8xf32>
    %50 = arith.mulf %45, %49 : vector<8x8xf32>
    %cst_25 = arith.constant dense<0.000000e+00> : vector<8x32xf32>
    %51 = tpu.matmul %50, %33, %cst_25 {dimension_numbers = #tpu.dot_dimension_numbers<[1], [0], [0], [1], [0, 0, 1, 1], [], []>} : vector<8x8xf32>, vector<8x32xf32>, vector<8x32xf32> -> vector<8x32xf32>
    %52 = vector.extract_strided_slice %26 {offsets = [8, 0], sizes = [8, 32], strides = [1, 1]} : vector<16x32xf32> to vector<8x32xf32>
    %53 = vector.extract_strided_slice %27 {offsets = [8, 0], sizes = [8, 32], strides = [1, 1]} : vector<16x32xf32> to vector<8x32xf32>
    %54 = vector.extract_strided_slice %28 {offsets = [8, 0], sizes = [8, 32], strides = [1, 1]} : vector<16x32xf32> to vector<8x32xf32>
    %55 = tpu.transpose %53, [1, 0] : vector<8x32xf32> -> vector<32x8xf32>
    %cst_26 = arith.constant dense<0.000000e+00> : vector<8x8xf32>
    %56 = tpu.matmul %52, %55, %cst_26 {dimension_numbers = #tpu.dot_dimension_numbers<[1], [0], [0], [1], [0, 0, 1, 1], [], []>} : vector<8x32xf32>, vector<32x8xf32>, vector<8x8xf32> -> vector<8x8xf32>
    %57 = vector.broadcast %30 : f32 to vector<8x8xf32>
    %58 = arith.mulf %56, %57 : vector<8x8xf32>
    %59 = vector.extract_strided_slice %16 {offsets = [1, 0], sizes = [1, 8], strides = [1, 1]} : vector<2x8xf32> to vector<1x8xf32>
    %60 = vector.broadcast %59 : vector<1x8xf32> to vector<8x8xf32>
    %61 = arith.addf %58, %60 : vector<8x8xf32>
    %cst_27 = arith.constant dense<0xFF800000> : vector<8xf32>
    %62 = vector.multi_reduction <maximumf>, %61, %cst_27 [1] : vector<8x8xf32> to vector<8xf32>
    %63 = vector.shape_cast %62 : vector<8xf32> to vector<8x1xf32>
    %64 = vector.broadcast %63 : vector<8x1xf32> to vector<8x8xf32>
    %65 = arith.subf %61, %64 : vector<8x8xf32>
    %66 = math.exp %65 : vector<8x8xf32>
    %cst_28 = arith.constant dense<0.000000e+00> : vector<8xf32>
    %67 = vector.multi_reduction <add>, %66, %cst_28 [1] : vector<8x8xf32> to vector<8xf32>
    %68 = vector.shape_cast %67 : vector<8xf32> to vector<8x1xf32>
    %69 = tpu.reciprocal %68 {approx = true} : vector<8x1xf32> -> vector<8x1xf32>
    %70 = vector.broadcast %69 : vector<8x1xf32> to vector<8x8xf32>
    %71 = arith.mulf %66, %70 : vector<8x8xf32>
    %cst_29 = arith.constant dense<0.000000e+00> : vector<8x32xf32>
    %72 = tpu.matmul %71, %54, %cst_29 {dimension_numbers = #tpu.dot_dimension_numbers<[1], [0], [0], [1], [0, 0, 1, 1], [], []>} : vector<8x8xf32>, vector<8x32xf32>, vector<8x32xf32> -> vector<8x32xf32>
    %73 = tpu.concatenate %51, %72 in 0 : vector<8x32xf32>, vector<8x32xf32> -> vector<16x32xf32>
    %cst_30 = arith.constant dense<0.000000e+00> : vector<16x32xf32>
    %74 = tpu.matmul %73, %3, %cst_30 {dimension_numbers = #tpu.dot_dimension_numbers<[1], [0], [0], [1], [0, 0, 1, 1], [], []>} : vector<16x32xf32>, vector<32x32xf32>, vector<16x32xf32> -> vector<16x32xf32>
    %75 = arith.addf %24, %74 : vector<16x32xf32>
    %cst_31 = arith.constant dense<0.000000e+00> : vector<16xf32>
    %76 = vector.multi_reduction <add>, %75, %cst_31 [1] : vector<16x32xf32> to vector<16xf32>
    %77 = vector.shape_cast %76 : vector<16xf32> to vector<16x1xf32>
    %cst_32 = arith.constant 3.200000e+01 : f32
    %78 = vector.broadcast %cst_32 : f32 to vector<16x1xf32>
    %79 = arith.divf %77, %78 : vector<16x1xf32>
    %80 = vector.broadcast %79 : vector<16x1xf32> to vector<16x32xf32>
    %81 = arith.subf %75, %80 : vector<16x32xf32>
    %82 = arith.mulf %81, %81 : vector<16x32xf32>
    %cst_33 = arith.constant dense<0.000000e+00> : vector<16xf32>
    %83 = vector.multi_reduction <add>, %82, %cst_33 [1] : vector<16x32xf32> to vector<16xf32>
    %84 = vector.shape_cast %83 : vector<16xf32> to vector<16x1xf32>
    %cst_34 = arith.constant 3.200000e+01 : f32
    %85 = vector.broadcast %cst_34 : f32 to vector<16x1xf32>
    %86 = arith.divf %84, %85 : vector<16x1xf32>
    %87 = vector.broadcast %79 : vector<16x1xf32> to vector<16x32xf32>
    %88 = arith.subf %75, %87 : vector<16x32xf32>
    %cst_35 = arith.constant 9.99999974E-6 : f32
    %89 = vector.broadcast %cst_35 : f32 to vector<16x1xf32>
    %90 = arith.addf %86, %89 : vector<16x1xf32>
    %91 = math.rsqrt %90 : vector<16x1xf32>
    %92 = vector.broadcast %91 : vector<16x1xf32> to vector<16x32xf32>
    %93 = arith.mulf %88, %92 : vector<16x32xf32>
    %94 = vector.broadcast %9 : vector<1x32xf32> to vector<16x32xf32>
    %95 = arith.mulf %93, %94 : vector<16x32xf32>
    %96 = vector.broadcast %10 : vector<1x32xf32> to vector<16x32xf32>
    %97 = arith.addf %95, %96 : vector<16x32xf32>
    %cst_36 = arith.constant dense<0.000000e+00> : vector<16x64xf32>
    %98 = tpu.matmul %97, %4, %cst_36 {dimension_numbers = #tpu.dot_dimension_numbers<[1], [0], [0], [1], [0, 0, 1, 1], [], []>} : vector<16x32xf32>, vector<32x64xf32>, vector<16x64xf32> -> vector<16x64xf32>
    %99 = vector.broadcast %7 : vector<1x64xf32> to vector<16x64xf32>
    %100 = arith.addf %98, %99 : vector<16x64xf32>
    %101 = arith.mulf %100, %100 : vector<16x64xf32>
    %102 = arith.mulf %100, %101 : vector<16x64xf32>
    %cst_37 = arith.constant 4.471500e-02 : f32
    %103 = vector.broadcast %cst_37 : f32 to vector<16x64xf32>
    %104 = arith.mulf %103, %102 : vector<16x64xf32>
    %105 = arith.addf %100, %104 : vector<16x64xf32>
    %cst_38 = arith.constant 0.797884583 : f32
    %106 = vector.broadcast %cst_38 : f32 to vector<16x64xf32>
    %107 = arith.mulf %106, %105 : vector<16x64xf32>
    %108 = math.tanh %107 : vector<16x64xf32>
    %cst_39 = arith.constant 1.000000e+00 : f32
    %109 = vector.broadcast %cst_39 : f32 to vector<16x64xf32>
    %110 = arith.addf %109, %108 : vector<16x64xf32>
    %cst_40 = arith.constant 5.000000e-01 : f32
    %111 = vector.broadcast %cst_40 : f32 to vector<16x64xf32>
    %112 = arith.mulf %111, %110 : vector<16x64xf32>
    %113 = arith.mulf %100, %112 : vector<16x64xf32>
    %cst_41 = arith.constant dense<0.000000e+00> : vector<16x32xf32>
    %114 = tpu.matmul %113, %5, %cst_41 {dimension_numbers = #tpu.dot_dimension_numbers<[1], [0], [0], [1], [0, 0, 1, 1], [], []>} : vector<16x64xf32>, vector<64x32xf32>, vector<16x32xf32> -> vector<16x32xf32>
    %115 = vector.broadcast %8 : vector<1x32xf32> to vector<16x32xf32>
    %116 = arith.addf %114, %115 : vector<16x32xf32>
    %117 = arith.addf %97, %116 : vector<16x32xf32>
    %cst_42 = arith.constant dense<0.000000e+00> : vector<16xf32>
    %118 = vector.multi_reduction <add>, %117, %cst_42 [1] : vector<16x32xf32> to vector<16xf32>
    %119 = vector.shape_cast %118 : vector<16xf32> to vector<16x1xf32>
    %cst_43 = arith.constant 3.200000e+01 : f32
    %120 = vector.broadcast %cst_43 : f32 to vector<16x1xf32>
    %121 = arith.divf %119, %120 : vector<16x1xf32>
    %122 = vector.broadcast %121 : vector<16x1xf32> to vector<16x32xf32>
    %123 = arith.subf %117, %122 : vector<16x32xf32>
    %124 = arith.mulf %123, %123 : vector<16x32xf32>
    %cst_44 = arith.constant dense<0.000000e+00> : vector<16xf32>
    %125 = vector.multi_reduction <add>, %124, %cst_44 [1] : vector<16x32xf32> to vector<16xf32>
    %126 = vector.shape_cast %125 : vector<16xf32> to vector<16x1xf32>
    %cst_45 = arith.constant 3.200000e+01 : f32
    %127 = vector.broadcast %cst_45 : f32 to vector<16x1xf32>
    %128 = arith.divf %126, %127 : vector<16x1xf32>
    %129 = vector.broadcast %121 : vector<16x1xf32> to vector<16x32xf32>
    %130 = arith.subf %117, %129 : vector<16x32xf32>
    %cst_46 = arith.constant 9.99999974E-6 : f32
    %131 = vector.broadcast %cst_46 : f32 to vector<16x1xf32>
    %132 = arith.addf %128, %131 : vector<16x1xf32>
    %133 = math.rsqrt %132 : vector<16x1xf32>
    %134 = vector.broadcast %133 : vector<16x1xf32> to vector<16x32xf32>
    %135 = arith.mulf %130, %134 : vector<16x32xf32>
    %136 = vector.broadcast %11 : vector<1x32xf32> to vector<16x32xf32>
    %137 = arith.mulf %135, %136 : vector<16x32xf32>
    %138 = vector.broadcast %12 : vector<1x32xf32> to vector<16x32xf32>
    %139 = arith.addf %137, %138 : vector<16x32xf32>
    %140 = vector.extract_strided_slice %139 {offsets = [0, 0], sizes = [1, 32], strides = [1, 1]} : vector<16x32xf32> to vector<1x32xf32>
    %141 = vector.extract_strided_slice %139 {offsets = [8, 0], sizes = [1, 32], strides = [1, 1]} : vector<16x32xf32> to vector<1x32xf32>
    %142 = tpu.concatenate %140, %141 in 0 : vector<1x32xf32>, vector<1x32xf32> -> vector<2x32xf32>
    %cst_47 = arith.constant dense<0.000000e+00> : vector<2x128xf32>
    %143 = tpu.matmul %142, %6, %cst_47 {dimension_numbers = #tpu.dot_dimension_numbers<[1], [0], [0], [1], [0, 0, 1, 1], [], []>} : vector<2x32xf32>, vector<32x128xf32>, vector<2x128xf32> -> vector<2x128xf32>
    %144 = vector.broadcast %13 : vector<1x128xf32> to vector<2x128xf32>
    %145 = arith.addf %143, %144 : vector<2x128xf32>
    %146 = tpu.iota {dimensions = array<i32: 1>} : vector<2x128xi32>
    %c2_i32 = arith.constant 2 : i32
    %147 = vector.broadcast %c2_i32 : i32 to vector<2x128xi32>
    %148 = arith.cmpi slt, %146, %147 : vector<2x128xi32>
    %cst_48 = arith.constant -1.000000e+30 : f32
    %149 = vector.broadcast %cst_48 : f32 to vector<2x128xf32>
    %150 = arith.select %148, %145, %149 : vector<2x128xi1>, vector<2x128xf32>
    %cst_49 = arith.constant dense<0xFF800000> : vector<2xf32>
    %151 = vector.multi_reduction <maximumf>, %150, %cst_49 [1] : vector<2x128xf32> to vector<2xf32>
    %152 = vector.shape_cast %151 : vector<2xf32> to vector<2x1xf32>
    %153 = vector.broadcast %152 : vector<2x1xf32> to vector<2x128xf32>
    %154 = arith.subf %150, %153 : vector<2x128xf32>
    %155 = math.exp %154 : vector<2x128xf32>
    %cst_50 = arith.constant 0.000000e+00 : f32
    %156 = vector.broadcast %cst_50 : f32 to vector<2x128xf32>
    %157 = arith.select %148, %155, %156 : vector<2x128xi1>, vector<2x128xf32>
    %cst_51 = arith.constant dense<0.000000e+00> : vector<2xf32>
    %158 = vector.multi_reduction <add>, %157, %cst_51 [1] : vector<2x128xf32> to vector<2xf32>
    %159 = vector.shape_cast %158 : vector<2xf32> to vector<2x1xf32>
    %160 = math.log %159 : vector<2x1xf32>
    %161 = vector.broadcast %160 : vector<2x1xf32> to vector<2x128xf32>
    %162 = arith.subf %154, %161 : vector<2x128xf32>
    %cst_52 = arith.constant 0.000000e+00 : f32
    %163 = vector.broadcast %cst_52 : f32 to vector<2x128xf32>
    %164 = arith.select %148, %162, %163 : vector<2x128xi1>, vector<2x128xf32>
    %165 = vector.broadcast %15 : vector<2x1xi32> to vector<2x128xi32>
    %166 = arith.cmpi eq, %146, %165 : vector<2x128xi32>
    %167 = arith.andi %148, %166 : vector<2x128xi1>
    %168 = arith.extui %167 : vector<2x128xi1> to vector<2x128xi32>
    %169 = arith.sitofp %168 : vector<2x128xi32> to vector<2x128xf32>
    %170 = arith.mulf %169, %164 : vector<2x128xf32>
    %171 = vector.shape_cast %170 : vector<2x128xf32> to vector<1x2x128xf32>
    %cst_53 = arith.constant dense<0.000000e+00> : vector<1xf32>
    %172 = vector.multi_reduction <add>, %171, %cst_53 [1, 2] : vector<1x2x128xf32> to vector<1xf32>
    %173 = vector.shape_cast %172 : vector<1xf32> to vector<1x1x1xf32>
    %174 = vector.extract %173[0, 0, 0] : f32 from vector<1x1x1xf32>
    %cst_54 = arith.constant 0.000000e+00 : f32
    %175 = arith.subf %cst_54, %174 : f32
    %cst_55 = arith.constant 5.000000e-01 : f32
    %176 = arith.mulf %175, %cst_55 : f32
    %cst_56 = arith.constant 0.000000e+00 : f32
    %177 = vector.broadcast %cst_56 : f32 to vector<1x128xf32>
    %178 = vector.broadcast %176 : f32 to vector<1x128xf32>
    %179 = arith.addf %177, %178 : vector<1x128xf32>
    %cst_57 = arith.constant 0.000000e+00 : f32
    %180 = vector.broadcast %cst_57 : f32 to vector<5x128xf32>
    %181 = tpu.concatenate %145, %179, %180 in 0 : vector<2x128xf32>, vector<1x128xf32>, vector<5x128xf32> -> vector<8x128xf32>
    %c0_58 = arith.constant 0 : index
    %c0_59 = arith.constant 0 : index
    %182 = vector.load %arg3[%c0_58, %c0_59] : memref<8x128xf32, #tpu.memory_space<vmem>>, vector<8x128xf32>
    tpu.vector_store %arg3[%c0_58, %c0_59], %181 {strides = array<i32>} : memref<8x128xf32, #tpu.memory_space<vmem>>, vector<8x128xf32>,
    return
  }
}

</mosaic_0001>

<bundles_post_ra>
// kernel: simple_rag_forward.1
= control target key start
LH: loop header
LB: loop body
LE: loop exit
PB: predicated region body
PF: predicated region fallthrough
CT: control target
= control target key end

     0   :  { %8 = vsyncpa [#allocation3], 0  ;;  %s1417_s12 = smov [#allocation2]   ;;  %s1542_s0 = inlined_call_operand.vmem [shape: s32[24,1], index: 0, kind: input, shape index: {}]   ;;  %s1543_s1 = inlined_call_operand.vmem [shape: f32[2,8], index: 1, kind: input, shape index: {}]   ;;  %s1544_s2 = inlined_call_operand.hbm [shape: f32[336,128], index: 2, kind: input, shape index: {}]   ;;  %s1545_s3 = inlined_call_operand.vmem [shape: f32[8,128], index: 3, kind: output, shape index: {}]  }
   0x1   :  { %s18_s13 = sshll.u32 %s1417_s12, 4  ;;  %s1393_s16 = scalar_lea.hbm %s1544_s2, 5376  ;;  %s19_s13 = int_to_ptr.vmem [resolvable:$true] %s18_s13 }
   0x2   :  { %p1394_p0 = scmp.ne.s32.totalorder %s1544_s2, %s1393_s16  ;;  %p1397_p1 = scmp.lt.u32.totalorder %s1393_s16, %s1544_s2 }
   0x4   :  { %p1399_p2 = pnand %p1397_p1, %p1394_p0 }
   0x6   :  { %1402 = shalt.err (!%p1399_p2)
}
   0x7   :  { %s1403_s21 = scalar_lea.vmem %s19_s13, 5376  ;;  %p1408_p4 = scmp.lt.s32.totalorder %s19_s13, %s19_s13 }
   0x8   :  { %p1404_p3 = scmp.ne.s32.totalorder %s19_s13, %s1403_s21  ;;  %p1409_p5 = scmp.lt.s32.totalorder %s1403_s21, %s1403_s21 }
   0xa   :  { %p1410_p6 = por %p1409_p5, %p1408_p4 }
   0xc   :  { %p1411_p7 = pnand %p1410_p6, %p1404_p3 }
   0xe   :  { %1414 = shalt.err (!%p1411_p7)
}
   0xf   :  { %s1418_s22 = smov 128   ;;  %s1419_s23 = smov 8  }
  0x10   :  { %24 = dma.hbm_to_vmem [thread:$0]  %s1544_s2, 5376, %s19_s13, [#allocation3], %s1418_s22, %s1418_s22, %s1419_s23  }
  0x11   :  { %1415 = dma.done.wait [#allocation3], 5376  }
  0x12   :  { %1416 = vsyncadd [#allocation3], 4294961920  ;;  %v1420_v0 = vmov 0   ;;  %v76_v1 = vld [vmem:[%s1542_s0] sm:$0xff]  ;;  %v29_v3 = vld [vmem:[#allocation2 + $0x8] sm:$0xff]  ;;  %v80_v30 = vlaneseq  ;;  %v1421_v33 = vmov 1.0  }
  0x13   :  { %1367 = vset.pattern.permute.xlu0 %v1420_v0  ;;  %1368 = vset.pattern.permute.xlu1 %v1420_v0  ;;  %v28_v2 = vld [vmem:[#allocation2] sm:$0xff]  ;;  %v30_v4 = vld [vmem:[#allocation2 + $0x10] sm:$0xff]  ;;  %v31_v5 = vld [vmem:[#allocation2 + $0x18] sm:$0xff]  ;;  %vm169_vm2 = vcmask 261120   ;;  %v1422_v43 = vmov 0.0   ;;  %vm1423_vm3 = vmmov 0  }
  0x14   :  { %83 = vperm.xlu0 %1367, %v76_v1   ;;  %v77_v6 = vld [vmem:[%s1542_s0 + $0x8] sm:$0xff]  ;;  %v1277_v7 = vpack.c.bf16 %v29_v3, %v28_v2  ;;  %v1281_v8 = vpack.c.bf16 %v31_v5, %v30_v4  ;;  %v32_v9 = vld [vmem:[#allocation2 + $0x20] sm:$0xff]  ;;  %v46_v13 = vld [vmem:[#allocation2 + $0x90] sm:$0xff]  ;;  %v1465_v31 = vand.u32 127, %v80_v30  ;;  %s1424_s2 = smov 96   ;;  %v330_v47 = vshrl.u32 %v80_v30, 7 }
  0x15   :  { %v33_v10 = vld [vmem:[#allocation2 + $0x28] sm:$0xff]  ;;  %v34_v14 = vld [vmem:[#allocation2 + $0x30] sm:$0xff]  ;;  %v35_v15 = vld [vmem:[#allocation2 + $0x38] sm:$0xff]  ;;  %vm334_vm4 = vcmask 64512   ;;  %s1425_s5 = smov 64   ;;  %vm821_vm5 = vcmask 523264  }
  0x16   :  { %1278 = vmatprep.subr.bf16.mxu0 %v1277_v7  ;;  %v1285_v11 = vpack.c.bf16 %v33_v10, %v32_v9  ;;  %v45_v12 = vld [vmem:[#allocation2 + $0x88] sm:$0xff]  ;;  %v1289_v17 = vpack.c.bf16 %v35_v15, %v34_v14  ;;  %v36_v18 = vld [vmem:[#allocation2 + $0x40] sm:$0xff]  ;;  %v38_v21 = vld [vmem:[#allocation2 + $0x50] sm:$0xff]  ;;  %v331_v48 = vsub.s32 0, %v330_v47  ;;  %v502_v2 = vsub.s32 1, %v330_v47 }
  0x17   :  { %1280 = vmatpush3.bf16.msra.mxu0 %v1277_v7  ;;  %v1309_v16 = vpack.c.bf16 %v46_v13, %v45_v12  ;;  %v37_v19 = vld [vmem:[#allocation2 + $0x48] sm:$0xff]  ;;  %v39_v22 = vld [vmem:[#allocation2 + $0x58] sm:$0xff]  ;;  %v40_v24 = vld [vmem:[#allocation2 + $0x60] sm:$0xff]  ;;  %vm946_vm6 = vcmask 1040384   ;;  %vm1025_vm7 = vcmp.lt.s32.totalorder %v1465_v31, 2  ;;  %vm1027_vm8 = vcmask 1041408  }
  0x18   :  { %86 = vperm.xlu0 %1367, %v77_v6   ;;  %1282 = vmatprep.subr.bf16.mxu0 %v1281_v8  ;;  %v1293_v20 = vpack.c.bf16 %v37_v19, %v36_v18  ;;  %v1297_v23 = vpack.c.bf16 %v39_v22, %v38_v21  ;;  %v41_v25 = vld [vmem:[#allocation2 + $0x68] sm:$0xff]  ;;  %v42_v27 = vld [vmem:[#allocation2 + $0x70] sm:$0xff]  ;;  %v43_v28 = vld [vmem:[#allocation2 + $0x78] sm:$0xff]  ;;  %vm1065_vm11 = vcmask 1042432  }
  0x19   :  { %1310 = vmatprep.subr.bf16.mxu1 %v1309_v16  ;;  %v1301_v26 = vpack.c.bf16 %v41_v25, %v40_v24  ;;  %v1305_v29 = vpack.c.bf16 %v43_v28, %v42_v27  ;;  %v47_v35 = vld [vmem:[#allocation2 + $0x98] sm:$0xff]  ;;  %v48_v36 = vld [vmem:[#allocation2 + $0xa0] sm:$0xff]  ;;  %v54_v47 = vld [vmem:[#allocation2 + $0xd0] sm:$0xff] }
  0x1a   :  { %1312 = vmatpush3.bf16.msra.mxu1 %v1309_v16  ;;  %v1313_v37 = vpack.c.bf16 %v48_v36, %v47_v35  ;;  %v44_v38 = vld [vmem:[#allocation2 + $0x80] sm:$0xff]  ;;  %v49_v16 = vld [vmem:[#allocation2 + $0xa8] sm:$0xff]  ;;  %v51_v21 = vld [vmem:[#allocation2 + $0xb8] sm:$0xff] }
  0x1b   :  { %1284 = vmatpush3.bf16.msra.mxu0 %v1281_v8  ;;  %v79_v49 = vld [vmem:[%s1543_s1] sm:$0x3] }
  0x1c   :  { %1286 = vmatprep.subr.bf16.mxu0 %v1285_v11  ;;  %1314 = vmatprep.subr.bf16.mxu1 %v1313_v37  ;;  %v332_v50 = vrot.slane %v79_v49, %v331_v48  ;;  %v503_v5 = vrot.slane %v79_v49, %v502_v2  ;;  %v52_v22 = vld [vmem:[#allocation2 + $0xc0] sm:$0xff]  ;;  %v55_v49 = vld [vmem:[#allocation2 + $0xd8] sm:$0xff] }
  0x1d   :  { %v1321_v25 = vpack.c.bf16 %v52_v22, %v51_v21 }
  0x1e   :  { %1316 = vmatpush3.bf16.msra.mxu1 %v1313_v37 }
  0x1f   :  { %1288 = vmatpush3.bf16.msra.mxu0 %v1285_v11  ;;  %1205 = vmatprep.subr.mxu1 %v1422_v43 }
  0x20   :  { %1290 = vmatprep.subr.bf16.mxu0 %v1289_v17 }
  0x23   :  { %1292 = vmatpush3.bf16.msra.mxu0 %v1289_v17  ;;  %v50_v17 = vld [vmem:[#allocation2 + $0xb0] sm:$0xff] }
  0x24   :  { %1294 = vmatprep.subr.bf16.mxu0 %v1293_v20  ;;  %v1317_v19 = vpack.c.bf16 %v50_v17, %v49_v16  ;;  %v1089_v16 = vld [vmem:[#allocation2 + $0x148] ss:$0 sm:$0xff] }
  0x27   :  { %1296 = vmatpush3.bf16.msra.mxu0 %v1293_v20 }
  0x28   :  { %1298 = vmatprep.subr.bf16.mxu0 %v1297_v23 }
  0x2b   :  { %1300 = vmatpush3.bf16.msra.mxu0 %v1297_v23 }
  0x2c   :  { %1302 = vmatprep.subr.bf16.mxu0 %v1301_v26 }
  0x2f   :  { %1304 = vmatpush3.bf16.msra.mxu0 %v1301_v26 }
  0x30   :  { %1306 = vmatprep.subr.bf16.mxu0 %v1305_v29 }
  0x33   :  { %1308 = vmatpush3.bf16.msra.mxu0 %v1305_v29 }
  0x93   :  { %v84_v32 = vpop.permute.xlu0 %83 }
  0x94   :  { %vm88_vm0 = vcmp.eq.s32.totalorder %v1465_v31, %v84_v32 }
  0x95   :  { %1191 = vmatprep.mubr.msk.f32.mxu0 %vm88_vm0, %v1421_v33 }
  0x97   :  { %v87_v34 = vpop.permute.xlu0 %86 }
  0x98   :  { %vm89_vm1 = vcmp.eq.s32.totalorder %v1465_v31, %v87_v34 }
  0x99   :  { %1192 = vmatmul.mubr.msk.f32.vlgmr.msra.gmra.mrb[0].mxu0 %vm89_vm1, %v1421_v33 }
 0x16c   :  { %v1193_v39 = vpop.f32.mrb[0].mxu0 }
 0x16d   :  { %v160_v40 = vpop.f32.mrb[1].mxu0  ;;  %v1471_v42 = vadd.f32 %v1193_v39, %v44_v38 }
 0x16e   :  { %v1469_v41 = vadd.f32 %v160_v40, %v44_v38 }
 0x170   :  { %1202 = vmatprep.mubr.msk.f32.mxu1 %vm169_vm2, %v1469_v41 }
 0x171   :  { %1203 = vmatmul.mubr.msk.f32.vlgmr.msra.gmra.mrb[0].mxu1 %vm169_vm2, %v1471_v42 }
 0x172   :  { %1207 = vmatprep.mubr.msk.f32.mxu1 %vm1423_vm3, %v1422_v43 }
 0x244   :  { %v1204_v44 = vpop.f32.mrb[0].mxu1 }
 0x245   :  { %v242_v45 = vpop.f32.mrb[1].mxu1 }
 0x246   :  { %252 = vrot.lane.b32.xlu1 %v242_v45, %s1424_s2 }
 0x2b8   :  { %v253_v46 = vpop.permute.xlu1 %252 }
 0x2b9   :  { %1206 = vmatpush3.xpose.msk.msra.mxu1 %vm169_vm2, %v253_v46 }
 0x2ba   :  { %1210 = vmatprep.subr.mxu1 %v1422_v43 }
 0x2bc   :  { %1208 = vmatmul.mubr.msk.f32.vlgmr.msra.gmra.mrb[2].mxu1 %vm169_vm2, %v242_v45 }
 0x2bd   :  { %1212 = vmatprep.mubr.msk.f32.mxu1 %vm1423_vm3, %v1422_v43 }
 0x38f   :  { %v324_v51 = vpop.f32.mrb[2].mxu1 }
 0x390   :  { %v328_v52 = vmul.f32 0.17677669, %v324_v51  ;;  %v1209_v53 = vpop.f32.mrb[3].mxu1 }
 0x392   :  { %v333_v54 = vadd.f32 %v332_v50, %v328_v52  ;;  %v56_v50 = vld [vmem:[#allocation2 + $0xe0] sm:$0xff] }
 0x393   :  { %v1329_v51 = vpack.c.bf16 %v56_v50, %v55_v49 }
 0x394   :  { %v335_v55 = vsel %vm334_vm4, %v333_v54, -inf }
 0x395   :  { %336 = vmax.xlane.f32.xlu1 %v335_v55 }
 0x3a6   :  { %423 = vrot.lane.b32.xlu1 %v1204_v44, %s1424_s2 }
 0x422   :  { %v337_v56 = vpop.xlane.xlu1 %336 }
 0x423   :  { %v338_v57 = vsub.f32 %v333_v54, %v337_v56 }
 0x425   :  { %v339_v58 = vmul.f32 1.442695, %v338_v57 }
 0x426   :  { %v424_v1 = vpop.permute.xlu1 %423 }
 0x427   :  { %1369 = vpow2.f32 %v339_v58 }
 0x431   :  { %v1370_v59 = vpop.eup %1369 }
 0x432   :  { %v341_v60 = vsel %vm334_vm4, %v1370_v59, 0.0 }
 0x433   :  { %342 = vadd.xlane.f32.xlu0 %v341_v60 }
 0x449   :  { %346 = vrot.lane.b32.xlu0 %v242_v45, %s1425_s5 }
 0x4c0   :  { %v343_v61 = vpop.xlane.xlu0 %342 }
 0x4c1   :  { %1371 = vrcp.f32 %v343_v61  ;;  %v1088_v61 = vld [vmem:[#allocation2 + $0x14b] ss:$0 sm:$0xff] }
 0x4c4   :  { %v347_v62 = vpop.permute.xlu0 %346 }
 0x4c5   :  { %1211 = vmatpush3.msra.mxu1 %v347_v62 }
 0x4c6   :  { %1215 = vmatprep.subr.mxu1 %v1422_v43 }
 0x4cb   :  { %v1372_v63 = vpop.eup %1371 }
 0x4cc   :  { %v345_v0 = vmul.f32 %v1372_v63, %v1370_v59  ;;  %v1087_v59 = vld [vmem:[#allocation2 + $0x14a] ss:$0 sm:$0xff] }
 0x4ce   :  { %1213 = vmatmul.mubr.msk.f32.vlgmr.msra.gmra.mrb[4].mxu1 %vm334_vm4, %v345_v0 }
 0x4cf   :  { %1216 = vmatpush3.xpose.msk.msra.mxu1 %vm169_vm2, %v424_v1  ;;  %1217 = vmatprep.mubr.msk.f32.mxu1 %vm1423_vm3, %v1422_v43 }
 0x4d0   :  { %1220 = vmatprep.subr.mxu1 %v1422_v43 }
 0x4d2   :  { %1218 = vmatmul.mubr.msk.f32.vlgmr.msra.gmra.mrb[6].mxu1 %vm169_vm2, %v1204_v44 }
 0x4d3   :  { %1222 = vmatprep.mubr.msk.f32.mxu1 %vm1423_vm3, %v1422_v43 }
 0x5a1   :  { %v418_v3 = vpop.f32.mrb[4].mxu1 }
 0x5a2   :  { %v1214_v4 = vpop.f32.mrb[5].mxu1 }
 0x5a3   :  { %v57_v4 = vld [vmem:[#allocation2 + $0xe8] sm:$0xff] }
 0x5a5   :  { %v495_v6 = vpop.f32.mrb[6].mxu1 }
 0x5a6   :  { %v499_v7 = vmul.f32 0.17677669, %v495_v6  ;;  %v1219_v8 = vpop.f32.mrb[7].mxu1 }
 0x5a7   :  { %v60_v8 = vld [vmem:[#allocation2 + $0x100] sm:$0xff] }
 0x5a8   :  { %v504_v9 = vadd.f32 %v503_v5, %v499_v7  ;;  %v58_v5 = vld [vmem:[#allocation2 + $0xf0] sm:$0xff]  ;;  %v59_v7 = vld [vmem:[#allocation2 + $0xf8] sm:$0xff] }
 0x5a9   :  { %v1333_v6 = vpack.c.bf16 %v58_v5, %v57_v4 }
 0x5aa   :  { %v505_v10 = vsel %vm334_vm4, %v504_v9, -inf }
 0x5ab   :  { %506 = vmax.xlane.f32.xlu1 %v505_v10  ;;  %v61_v10 = vld [vmem:[#allocation2 + $0x108] sm:$0xff] }
 0x638   :  { %v507_v11 = vpop.xlane.xlu1 %506 }
 0x639   :  { %v508_v12 = vsub.f32 %v504_v9, %v507_v11  ;;  %v1337_v9 = vpack.c.bf16 %v60_v8, %v59_v7  ;;  %v62_v11 = vld [vmem:[#allocation2 + $0x110] sm:$0xff] }
 0x63b   :  { %v509_v13 = vmul.f32 1.442695, %v508_v12  ;;  %v1341_v12 = vpack.c.bf16 %v62_v11, %v61_v10  ;;  %v1095_v10 = vld [vmem:[#allocation2 + $0x14c] ss:$0 sm:$0xff] }
 0x63d   :  { %1373 = vpow2.f32 %v509_v13  ;;  %v63_v13 = vld [vmem:[#allocation2 + $0x118] sm:$0xff] }
 0x647   :  { %v1374_v14 = vpop.eup %1373 }
 0x648   :  { %v511_v15 = vsel %vm334_vm4, %v1374_v14, 0.0 }
 0x649   :  { %512 = vadd.xlane.f32.xlu0 %v511_v15 }
 0x65f   :  { %516 = vrot.lane.b32.xlu0 %v1204_v44, %s1425_s5 }
 0x6d6   :  { %v513_v18 = vpop.xlane.xlu0 %512 }
 0x6d7   :  { %1375 = vrcp.f32 %v513_v18 }
 0x6da   :  { %v517_v20 = vpop.permute.xlu0 %516 }
 0x6db   :  { %1221 = vmatpush3.msra.mxu1 %v517_v20 }
 0x6dc   :  { %1318 = vmatprep.subr.bf16.mxu1 %v1317_v19 }
 0x6e1   :  { %v1376_v23 = vpop.eup %1375 }
 0x6e2   :  { %v515_v24 = vmul.f32 %v1376_v23, %v1374_v14  ;;  %v64_v14 = vld [vmem:[#allocation2 + $0x120] sm:$0xff] }
 0x6e3   :  { %v1345_v15 = vpack.c.bf16 %v64_v14, %v63_v13 }
 0x6e4   :  { %1223 = vmatmul.mubr.msk.f32.vlgmr.msra.gmra.mrb[8].mxu1 %vm334_vm4, %v515_v24 }
 0x6e5   :  { %1233 = vmatprep.mubr.msk.f32.mxu1 %vm169_vm2, %v418_v3  ;;  %1320 = vmatpush3.bf16.msra.mxu1 %v1317_v19 }
 0x6e6   :  { %1322 = vmatprep.subr.bf16.mxu1 %v1321_v25 }
 0x6e9   :  { %1324 = vmatpush3.bf16.msra.mxu1 %v1321_v25 }
 0x6ea   :  { %1334 = vmatprep.subr.bf16.mxu1 %v1333_v6 }
 0x7b7   :  { %v588_v26 = vpop.f32.mrb[8].mxu1 }
 0x7b8   :  { %v1224_v27 = vpop.f32.mrb[9].mxu1  ;;  %1234 = vmatmul.mubr.msk.f32.vlgmr.msra.gmra.mrb[10].mxu1 %vm169_vm2, %v588_v26 }
 0x7b9   :  { %1336 = vmatpush3.bf16.msra.mxu1 %v1333_v6 }
 0x7ba   :  { %1338 = vmatprep.subr.bf16.mxu1 %v1337_v9 }
 0x7bd   :  { %1340 = vmatpush3.bf16.msra.mxu1 %v1337_v9 }
 0x7be   :  { %1342 = vmatprep.subr.bf16.mxu1 %v1341_v12 }
 0x7c1   :  { %1344 = vmatpush3.bf16.msra.mxu1 %v1341_v12  ;;  %v1096_v12 = vld [vmem:[#allocation2 + $0x14d] ss:$0 sm:$0xff] }
 0x7c2   :  { %1346 = vmatprep.subr.bf16.mxu1 %v1345_v15 }
 0x7c5   :  { %1348 = vmatpush3.bf16.msra.mxu1 %v1345_v15 }
 0x88b   :  { %v1235_v28 = vpop.f32.mrb[10].mxu1 }
 0x88c   :  { %v664_v29 = vpop.f32.mrb[11].mxu1  ;;  %v674_v32 = vadd.f32 %v1235_v28, %v1471_v42  ;;  %v53_v42 = vld [vmem:[#allocation2 + $0xc8] sm:$0xff] }
 0x88d   :  { %v673_v30 = vadd.f32 %v664_v29, %v1469_v41  ;;  %v1325_v48 = vpack.c.bf16 %v54_v47, %v53_v42 }
 0x88e   :  { %v678_v34 = vsel %vm169_vm2, %v674_v32, 0.0 }
 0x88f   :  { %v675_v33 = vsel %vm169_vm2, %v673_v30, 0.0  ;;  %1326 = vmatprep.subr.bf16.mxu0 %v1325_v48 }
 0x890   :  { %676 = vadd.xlane.f32.xlu1 %v675_v33  ;;  %1328 = vmatpush3.bf16.msra.mxu0 %v1325_v48 }
 0x891   :  { %1330 = vmatprep.subr.bf16.mxu0 %v1329_v51 }
 0x894   :  { %679 = vadd.xlane.f32.xlu1 %v678_v34  ;;  %1332 = vmatpush3.bf16.msra.mxu0 %v1329_v51 }
 0x91d   :  { %v677_v35 = vpop.xlane.xlu1 %676 }
 0x91e   :  { %v682_v36 = vmul.f32 0.03125, %v677_v35 }
 0x920   :  { %v684_v37 = vsub.f32 %v673_v30, %v682_v36 }
 0x921   :  { %v680_v38 = vpop.xlane.xlu1 %679 }
 0x922   :  { %v683_v39 = vmul.f32 0.03125, %v680_v38  ;;  %v686_v40 = vmul.f32 %v684_v37, %v684_v37 }
 0x924   :  { %v685_v44 = vsub.f32 %v674_v32, %v683_v39  ;;  %v688_v45 = vsel %vm169_vm2, %v686_v40, 0.0  ;;  %v1092_v40 = vld [vmem:[#allocation2 + $0x149] ss:$0 sm:$0xff] }
 0x925   :  { %689 = vadd.xlane.f32.xlu1 %v688_v45 }
 0x926   :  { %v687_v46 = vmul.f32 %v685_v44, %v685_v44 }
 0x928   :  { %v691_v41 = vsel %vm169_vm2, %v687_v46, 0.0 }
 0x929   :  { %692 = vadd.xlane.f32.xlu1 %v691_v41 }
 0x9b2   :  { %v690_v52 = vpop.xlane.xlu1 %689 }
 0x9b3   :  { %v694_v53 = vmul.f32 0.03125, %v690_v52 }
 0x9b5   :  { %v696_v54 = vadd.f32 1e-05, %v694_v53 }
 0x9b6   :  { %v693_v55 = vpop.xlane.xlu1 %692 }
 0x9b7   :  { %1377 = vrsqrt.f32 %v696_v54  ;;  %v695_v56 = vmul.f32 0.03125, %v693_v55 }
 0x9b9   :  { %v697_v57 = vadd.f32 1e-05, %v695_v56 }
 0x9bb   :  { %1379 = vrsqrt.f32 %v697_v57 }
 0x9c1   :  { %v1378_v58 = vpop.eup %1377 }
 0x9c2   :  { %v700_v60 = vmul.f32 %v1378_v58, %v684_v37 }
 0x9c4   :  { %v706_v62 = vmul.f32 %v1087_v59, %v700_v60  ;;  %v65_v60 = vld [vmem:[#allocation2 + $0x128] sm:$0xff] }
 0x9c5   :  { %v1380_v63 = vpop.eup %1379 }
 0x9c6   :  { %v701_v0 = vmul.f32 %v1380_v63, %v685_v44  ;;  %v712_v1 = vadd.f32 %v1088_v61, %v706_v62  ;;  %v1426_v63 = vmov 0.0|0.0  }
 0x9c7   :  { %1349 = vmatprep.subr.bf16.mxu0 %v1426_v63 }
 0x9c8   :  { %v707_v2 = vmul.f32 %v1087_v59, %v701_v0  ;;  %1244 = vmatprep.mubr.msk.f32.mxu0 %vm169_vm2, %v712_v1  ;;  %v67_v0 = vld [vmem:[#allocation2 + $0x138] sm:$0xff] }
 0x9ca   :  { %v713_v3 = vadd.f32 %v1088_v61, %v707_v2  ;;  %v66_v61 = vld [vmem:[#allocation2 + $0x130] sm:$0xff] }
 0x9cb   :  { %v1350_v62 = vpack.c.bf16 %v66_v61, %v65_v60 }
 0x9cc   :  { %1245 = vmatmul.mubr.msk.f32.vlgmr.msra.gmra.mrb[2].mxu0 %vm169_vm2, %v713_v3 }
 0x9cd   :  { %1274 = vmatprep.mubr.msk.f32.mxu0 %vm1423_vm3, %v1422_v43  ;;  %1351 = vmatpush3.bf16.msra.mxu0 %v1350_v62 }
 0x9ce   :  { %1352 = vmatprep.subr.bf16.mxu0 %v1426_v63 }
 0xa9f   :  { %v1246_v17 = vpop.f32.mrb[2].mxu0 }
 0xaa0   :  { %v796_v18 = vadd.f32 %v1246_v17, %v1089_v16  ;;  %v790_v19 = vpop.f32.mrb[3].mxu0 }
 0xaa1   :  { %v791_v20 = vadd.f32 %v1089_v16, %v790_v19 }
 0xaa2   :  { %v800_v21 = vmul.f32 %v796_v18, %v796_v18 }
 0xaa3   :  { %v799_v22 = vmul.f32 %v791_v20, %v791_v20 }
 0xaa4   :  { %v802_v23 = vmul.f32 %v800_v21, %v796_v18  ;;  %v1097_v21 = vld [vmem:[#allocation2 + $0x14e] ss:$0 sm:$0xff] }
 0xaa5   :  { %v801_v24 = vmul.f32 %v799_v22, %v791_v20 }
 0xaa6   :  { %v804_v25 = vmul.f32 0.044715, %v802_v23 }
 0xaa7   :  { %v803_v26 = vmul.f32 0.044715, %v801_v24 }
 0xaa8   :  { %v806_v27 = vadd.f32 %v804_v25, %v796_v18 }
 0xaa9   :  { %v805_v28 = vadd.f32 %v803_v26, %v791_v20 }
 0xaaa   :  { %v808_v29 = vmul.f32 0.7978846, %v806_v27 }
 0xaab   :  { %v807_v30 = vmul.f32 0.7978846, %v805_v28 }
 0xaac   :  { %1381 = vtanh.f32 %v808_v29 }
 0xaad   :  { %1383 = vtanh.f32 %v807_v30 }
 0xab6   :  { %v1382_v32 = vpop.eup %1381 }
 0xab7   :  { %v1384_v33 = vpop.eup %1383  ;;  %v812_v34 = vadd.f32 1.0, %v1382_v32 }
 0xab8   :  { %v811_v35 = vadd.f32 1.0, %v1384_v33 }
 0xab9   :  { %v814_v36 = vmul.f32 0.5, %v812_v34  ;;  %v78_v34 = vld [vmem:[%s1542_s0 + $0x10] sm:$0x3] }
 0xaba   :  { %v813_v37 = vmul.f32 0.5, %v811_v35 }
 0xabb   :  { %v816_v39 = vmul.f32 %v814_v36, %v796_v18 }
 0xabc   :  { %v815_v38 = vmul.f32 %v813_v37, %v791_v20 }
 0xabe   :  { %1263 = vmatprep.mubr.msk.f32.mxu1 %vm821_vm5, %v815_v38 }
 0xabf   :  { %1264 = vmatmul.mubr.msk.f32.vlgmr.msra.gmra.mrb[12].mxu1 %vm821_vm5, %v816_v39 }
 0xb92   :  { %v1265_v44 = vpop.f32.mrb[12].mxu1 }
 0xb93   :  { %v900_v45 = vadd.f32 %v1265_v44, %v1092_v40  ;;  %v894_v46 = vpop.f32.mrb[13].mxu1 }
 0xb94   :  { %v895_v41 = vadd.f32 %v1092_v40, %v894_v46 }
 0xb95   :  { %v904_v42 = vadd.f32 %v900_v45, %v713_v3 }
 0xb96   :  { %v903_v48 = vadd.f32 %v895_v41, %v712_v1  ;;  %v68_v1 = vld [vmem:[#allocation2 + $0x140] sm:$0xff] }
 0xb97   :  { %v908_v47 = vsel %vm169_vm2, %v904_v42, 0.0  ;;  %v1353_v2 = vpack.c.bf16 %v68_v1, %v67_v0 }
 0xb98   :  { %909 = vadd.xlane.f32.xlu1 %v908_v47  ;;  %v905_v49 = vsel %vm169_vm2, %v903_v48, 0.0 }
 0xb99   :  { %1354 = vmatpush3.bf16.msra.mxu0 %v1353_v2 }
 0xb9c   :  { %906 = vadd.xlane.f32.xlu1 %v905_v49 }
 0xc25   :  { %v910_v50 = vpop.xlane.xlu1 %909 }
 0xc26   :  { %v912_v51 = vmul.f32 0.03125, %v910_v50 }
 0xc28   :  { %v914_v52 = vsub.f32 %v904_v42, %v912_v51 }
 0xc29   :  { %v907_v53 = vpop.xlane.xlu1 %906 }
 0xc2a   :  { %v911_v54 = vmul.f32 0.03125, %v907_v53  ;;  %v916_v55 = vmul.f32 %v914_v52, %v914_v52 }
 0xc2c   :  { %v913_v56 = vsub.f32 %v903_v48, %v911_v54  ;;  %v920_v57 = vsel %vm169_vm2, %v916_v55, 0.0 }
 0xc2d   :  { %921 = vadd.xlane.f32.xlu0 %v920_v57 }
 0xc2e   :  { %v915_v58 = vmul.f32 %v913_v56, %v913_v56 }
 0xc30   :  { %v917_v59 = vsel %vm169_vm2, %v915_v58, 0.0 }
 0xc31   :  { %918 = vadd.xlane.f32.xlu1 %v917_v59 }
 0xcba   :  { %v922_v3 = vpop.xlane.xlu0 %921 }
 0xcbb   :  { %v924_v4 = vmul.f32 0.03125, %v922_v3 }
 0xcbd   :  { %v926_v5 = vadd.f32 1e-05, %v924_v4 }
 0xcbe   :  { %v919_v6 = vpop.xlane.xlu1 %918 }
 0xcbf   :  { %1385 = vrsqrt.f32 %v926_v5  ;;  %v923_v7 = vmul.f32 0.03125, %v919_v6 }
 0xcc1   :  { %v925_v8 = vadd.f32 1e-05, %v923_v7 }
 0xcc3   :  { %1387 = vrsqrt.f32 %v925_v8 }
 0xcc9   :  { %v1386_v9 = vpop.eup %1385 }
 0xcca   :  { %v930_v11 = vmul.f32 %v1386_v9, %v914_v52 }
 0xccc   :  { %v936_v13 = vmul.f32 %v1095_v10, %v930_v11 }
 0xccd   :  { %v1388_v14 = vpop.eup %1387 }
 0xcce   :  { %v929_v15 = vmul.f32 %v1388_v14, %v913_v56  ;;  %v942_v16 = vadd.f32 %v1096_v12, %v936_v13 }
 0xcd0   :  { %v935_v17 = vmul.f32 %v1095_v10, %v929_v15  ;;  %v944_v19 = vrot.slane %v942_v16, 7 }
 0xcd2   :  { %v941_v18 = vadd.f32 %v1096_v12, %v935_v17 }
 0xcd4   :  { %v947_v20 = vsel %vm946_vm6, %v941_v18, %v944_v19 }
 0xcd5   :  { %1275 = vmatmul.mubr.msk.f32.vlgmr.msra.gmra.mrb[4].mxu0 %vm169_vm2, %v947_v20 }
 0xda8   :  { %v1021_v22 = vpop.f32.mrb[4].mxu0 }
 0xda9   :  { %v1022_v23 = vadd.f32 %v1097_v21, %v1021_v22  ;;  %v1276_v24 = vpop.f32.mrb[5].mxu0 }
 0xdab   :  { %v1026_v25 = vsel %vm1025_vm7, %v1022_v23, -1e+30 }
 0xdac   :  { %v1028_v26 = vsel %vm1027_vm8, %v1026_v25, -inf }
 0xdad   :  { %1029 = vmax.xlane.f32.xlu1 %v1028_v26 }
 0xe3a   :  { %v1030_v27 = vpop.xlane.xlu1 %1029 }
 0xe3b   :  { %v1031_v28 = vsub.f32 %v1026_v25, %v1030_v27 }
 0xe3d   :  { %v1032_v29 = vmul.f32 1.442695, %v1031_v28 }
 0xe3f   :  { %1389 = vpow2.f32 %v1032_v29 }
 0xe49   :  { %v1390_v30 = vpop.eup %1389 }
 0xe4a   :  { %v1034_v32 = vsel %vm1025_vm7, %v1390_v30, 0.0 }
 0xe4b   :  { %v1035_v33 = vsel %vm1027_vm8, %v1034_v32, 0.0 }
 0xe4c   :  { %1036 = vadd.xlane.f32.xlu1 %v1035_v33 }
 0xe5d   :  { %1043 = vperm.xlu1 %1368, %v78_v34  }
 0xed9   :  { %v1037_v35 = vpop.xlane.xlu1 %1036 }
 0xeda   :  { %1391 = vlog2.f32 %v1037_v35 }
 0xedd   :  { %v1044_v36 = vpop.permute.xlu1 %1043 }
 0xede   :  { %vm1045_vm9 = vcmp.eq.s32.totalorder %v1465_v31, %v1044_v36 }
 0xedf   :  { %vm1046_vm10 = vmand %vm1025_vm7, %vm1045_vm9 }
 0xee0   :  { %v1099_v40 = vsel %vm1046_vm10, 1.0, %v1422_v43 }
 0xee4   :  { %v1392_v37 = vpop.eup %1391 }
 0xee5   :  { %v1039_v38 = vmul.f32 0.6931472, %v1392_v37 }
 0xee7   :  { %v1040_v39 = vsub.f32 %v1031_v28, %v1039_v38 }
 0xee9   :  { %v1041_v44 = vsel %vm1025_vm7, %v1040_v39, 0.0 }
 0xeea   :  { %v1049_v45 = vmul.f32 %v1099_v40, %v1041_v44 }
 0xeec   :  { %v1050_v46 = vsel %vm1027_vm8, %v1049_v45, 0.0 }
 0xeed   :  { %1051 = vadd.xlane.f32.xlu0 %v1050_v46 }
 0xf7a   :  { %v1052_v41 = vpop.xlane.xlu0 %1051 }
 0xf7b   :  { %v1053_v42 = vrot.slane %v1052_v41, 4 }
 0xf7d   :  { %v1054_v47 = vadd.f32 %v1053_v42, %v1052_v41 }
 0xf7f   :  { %v1055_v48 = vrot.slane %v1054_v47, 2 }
 0xf81   :  { %v1056_v49 = vadd.f32 %v1055_v48, %v1054_v47 }
 0xf83   :  { %v1057_v50 = vrot.slane %v1056_v49, 1 }
 0xf85   :  { %v1058_v51 = vadd.f32 %v1057_v50, %v1056_v49 }
 0xf87   :  { %1355 = vpush %v1058_v51 }
 0xfb8   :  { %s1356_s0 = spop %1355 }
 0xfb9   :  { %s1060_s7 = ssub.f32 0.0, %s1356_s0 }
 0xfbb   :  { %s1061_s8 = smul.f32 0.5, %s1060_s7 }
 0xfbd   :  { %v1062_v43 = vstv %s1061_s8 }
 0xfbe   :  { %v1064_v31 = vsel %vm1027_vm8, %v1022_v23, %v1062_v43 }
 0xfbf   :  { %v1066_v52 = vsel %vm1065_vm11, %v1064_v31, 0.0 }
 0xfc0   :  { %1067 = vst [vmem:[%s1545_s3] sm:$0xff] %v1066_v52 }
 0xfc1   :  { %1072 = vsyncpa [#allocation3], 1 }

</bundles_post_ra>
